<compile_context>
chip_gen: v6e
topology: v6e:2x2x1
jax: 0.10.0
libtpu: 0.0.40
codegen_flags: <defaults>
</compile_context>

<pallas_src>
import functools

import jax
import jax.numpy as jnp
from jax import lax
from jax.experimental import pallas as pl
from jax.experimental.pallas import tpu as pltpu


# ----------------------------------------------------------------------------
# helpers
# ----------------------------------------------------------------------------
_ONEHOT_MAX_GPAD = 64          # above this, pre-gather R per point instead
_MAX_TILE_LANES = 32768        # lane-tile cap
_ONEHOT_B_BYTES = 4 << 20      # keep the (3*G_pad, tile) f32 MXU operand <= 4 MiB


def _round_up(v, m):
    return (v + m - 1) // m * m


def _choose_tile(m, g_pad=None):
    """Pick the lane tile (static, from Python-int shapes).

    - large tiles (up to 32K lanes) so the ~0.35 us per-grid-step overhead is
      well below the per-step HBM time on every generation,
    - capped so the in-kernel (3*g_pad, tile) f32 operand stays <= ~4 MiB,
    - >= 2 grid steps (>= 4 when there is enough work) so v7x's two TensorCores
      both get work from the "parallel" grid axis.
    """
    m128 = _round_up(max(m, 1), 128)
    cap = _MAX_TILE_LANES
    if g_pad is not None:
        cap = max(128, min(cap, (_ONEHOT_B_BYTES // (4 * 3 * g_pad)) // 128 * 128))
    if m128 <= min(cap, 2048):
        return m128                       # tiny problem: single step
    target_steps = 4 if m128 >= 8192 else 2
    tile = min(cap, _round_up((m128 + target_steps - 1) // target_steps, 128))
    return max(128, tile)


# ----------------------------------------------------------------------------
# Main Pallas kernel (small/medium G): on-chip one-hot gather + MXU combine
#   x_ref   : (3, T)            point coords, coord-major
#   idx_ref : (1, T)   int32    per-point graph id
#   w_ref   : (8, 3*G_pad) f32  W[j, k*G_pad + g] = R[g, j, k]   (rows 3..7 zero)
#   o_ref   : (3, T)            o[j, n] = sum_k x[k, n] * R[g(n), j, k]
# ----------------------------------------------------------------------------
def _rotate_onehot_kernel(x_ref, idx_ref, w_ref, o_ref):
    x = x_ref[...].astype(jnp.float32)        # (3, T)
    idx = idx_ref[...]                        # (1, T) int32
    w = w_ref[...]                            # (8, 3*G_pad) f32
    g_pad = w.shape[1] // 3
    t = x.shape[1]

    # one-hot graph membership (G_pad is small: a multiple of 8, <= 64)
    gids = lax.broadcasted_iota(jnp.int32, (g_pad, t), 0)
    onehot = (gids == idx).astype(jnp.float32)                     # (G_pad, T)

    # B[k*G_pad + g, n] = onehot[g, n] * x[k, n]
    # Three dense (G_pad, T) multiplies; concat offsets (0, G_pad, 2*G_pad) are
    # sublane-aligned because G_pad % 8 == 0.
    b = jnp.concatenate(
        [onehot * x[0:1, :], onehot * x[1:2, :], onehot * x[2:3, :]], axis=0
    )                                                              # (3*G_pad, T)

    out = jnp.dot(w, b, preferred_element_type=jnp.float32)        # (8, T) on MXU
    o_ref[...] = out[:3, :].astype(o_ref.dtype)                    # one lane-dense store


# ----------------------------------------------------------------------------
# Fallback kernel (large G): rotation rows pre-gathered per point in HBM
#   x_ref : (3, T);  r_ref : (16, T) f32 with rows 3j+k = R[g(n), j, k]
# ----------------------------------------------------------------------------
def _rotate_pregathered_kernel(x_ref, r_ref, o_ref):
    x = x_ref[...].astype(jnp.float32)
    r = r_ref[...]
    rows = []
    for j in range(3):
        rows.append(
            x[0:1, :] * r[3 * j + 0:3 * j + 1, :]
            + x[1:2, :] * r[3 * j + 1:3 * j + 2, :]
            + x[2:3, :] * r[3 * j + 2:3 * j + 3, :]
        )
    o_ref[...] = jnp.concatenate(rows, axis=0).astype(o_ref.dtype)


def rotate_rows_pallas(points, graph_idx, r_flat):
    """points: [M, 3], graph_idx: [M] int, r_flat: [G, 9] (row-major R[g].reshape(9)).

    Returns [M, 3] with out[n] = points[n] @ R[graph_idx[n]].T
    """
    m = points.shape[0]
    g = r_flat.shape[0]
    dtype = points.dtype

    g_pad = _round_up(g, 8)                   # sublane granularity, not 128
    r32 = r_flat.astype(jnp.float32)          # rotations stay f32 regardless of dtype

    # TODO(synk): the pad/transpose here and the final slice/transpose are
    # layout plumbing; a pipeline that keeps coordinates coord-major (3, M)
    # end-to-end would remove ~2 extra HBM passes over the data.
    if g_pad <= _ONEHOT_MAX_GPAD:
        tile = _choose_tile(m, g_pad)
        m_pad = _round_up(max(m, 1), tile)

        x_t = jnp.pad(points, ((0, m_pad - m), (0, 0))).T                      # (3, M_pad)
        idx_t = jnp.pad(graph_idx.astype(jnp.int32), (0, m_pad - m)).reshape(1, m_pad)
        # W[j, k*g_pad + g] = R[g, j, k], rows padded 3 -> 8, graphs padded to g_pad.
        w = jnp.transpose(r32.reshape(g, 3, 3), (1, 2, 0))                     # (3, 3, G)
        w = jnp.pad(w, ((0, 5), (0, 0), (0, g_pad - g))).reshape(8, 3 * g_pad)

        out_t = pl.pallas_call(
            _rotate_onehot_kernel,
            out_shape=jax.ShapeDtypeStruct((3, m_pad), dtype),
            grid=(m_pad // tile,),
            in_specs=[
                pl.BlockSpec((3, tile), lambda i: (0, i)),
                pl.BlockSpec((1, tile), lambda i: (0, i)),
                pl.BlockSpec((8, 3 * g_pad), lambda i: (0, 0)),   # VMEM-resident
            ],
            out_specs=pl.BlockSpec((3, tile), lambda i: (0, i)),
            compiler_params=pltpu.CompilerParams(
                dimension_semantics=("parallel",),
            ),
        )(x_t, idx_t, w)
    else:
        # Large-G fallback: the O(G_pad x T) one-hot would cost more VPU/vst
        # work than the extra 36 B/point of HBM for a pre-gathered table.
        tile = _choose_tile(m)
        m_pad = _round_up(max(m, 1), tile)

        x_t = jnp.pad(points, ((0, m_pad - m), (0, 0))).T                      # (3, M_pad)
        per_pt = r32[graph_idx]                                                # (M, 9) gather
        r_t = jnp.pad(per_pt, ((0, m_pad - m), (0, 16 - 9))).T                 # (16, M_pad)

        out_t = pl.pallas_call(
            _rotate_pregathered_kernel,
            out_shape=jax.ShapeDtypeStruct((3, m_pad), dtype),
            grid=(m_pad // tile,),
            in_specs=[
                pl.BlockSpec((3, tile), lambda i: (0, i)),
                pl.BlockSpec((16, tile), lambda i: (0, i)),
            ],
            out_specs=pl.BlockSpec((3, tile), lambda i: (0, i)),
            compiler_params=pltpu.CompilerParams(
                dimension_semantics=("parallel",),
            ),
        )(x_t, r_t)

    return out_t[:, :m].T


# ----------------------------------------------------------------------------
# Glue: Rodrigues rotation matrices + per-graph apply mask (plain JAX)
# ----------------------------------------------------------------------------
def random_rotation_matrices(key, num_graphs, dtype=jnp.float32):
    """Batch of random 3x3 rotation matrices via Rodrigues' formula."""
    k_axis, k_angle = jax.random.split(key)
    axis = jax.random.normal(k_axis, (num_graphs, 3), dtype=dtype)
    axis = axis / jnp.linalg.norm(axis, axis=-1, keepdims=True)
    angle = jax.random.uniform(k_angle, (num_graphs, 1, 1), dtype=dtype) * 2 * jnp.pi
    z = jnp.zeros((num_graphs,), dtype=dtype)
    K = jnp.stack(
        [
            jnp.stack([z, -axis[:, 2], axis[:, 1]], axis=-1),
            jnp.stack([axis[:, 2], z, -axis[:, 0]], axis=-1),
            jnp.stack([-axis[:, 1], axis[:, 0], z], axis=-1),
        ],
        axis=1,
    )  # [G, 3, 3]
    I = jnp.eye(3, dtype=dtype)[None]
    R = I + jnp.sin(angle) * K + (1.0 - jnp.cos(angle)) * jnp.matmul(K, K)
    return R


@functools.partial(jax.jit, static_argnames=("rotation_prob", "num_graphs"))
def graph_rotation_transform(
    key, x, edge_attr, y, node_graph_idx, edge_graph_idx, *,
    rotation_prob=0.5, num_graphs=None,
):
    """JAX / Pallas equivalent of GraphRotationTransform.forward on a batched graph.

    x:        [N, 3] node coordinates
    edge_attr:[E, 3] edge displacement vectors (or None)
    y:        per-graph targets, element count a multiple of 3, rows a multiple
              of num_graphs when viewed as (-1, 3)  (or None)
    node_graph_idx / edge_graph_idx: int graph id per node / edge
    num_graphs: pass explicitly if y is None (required under jit).
    """
    if num_graphs is None:
        if y is None:
            raise ValueError("num_graphs must be given explicitly when y is None.")
        num_graphs = y.shape[0]

    k_prob, k_rot = jax.random.split(key)

    # per-graph "apply rotation?" coin flip (torch.rand(1) < rotation_prob per graph)
    apply = jax.random.uniform(k_prob, (num_graphs,)) < rotation_prob
    R = random_rotation_matrices(k_rot, num_graphs, dtype=jnp.float32)  # keep f32
    I = jnp.broadcast_to(jnp.eye(3, dtype=jnp.float32), R.shape)
    R = jnp.where(apply[:, None, None], R, I)            # [G, 3, 3] f32
    r_flat = R.reshape(num_graphs, 9)                    # r_flat[g, 3j+k] = R[g,j,k]

    # --- fuse x / edge_attr / y into a single kernel launch --------------------
    pts = [x]
    idxs = [node_graph_idx.astype(jnp.int32)]
    n_nodes = x.shape[0]
    n_edges = 0
    if edge_attr is not None:
        pts.append(edge_attr)
        idxs.append(edge_graph_idx.astype(jnp.int32))
        n_edges = edge_attr.shape[0]
    n_y = 0
    if y is not None:
        if y.size % 3 != 0:
            raise ValueError("y element count must be a multiple of 3.")
        y_flat = y.reshape(-1, 3)
        if y_flat.shape[0] % num_graphs != 0:
            raise ValueError("y rows must be a multiple of num_graphs.")
        rows_per_graph = y_flat.shape[0] // num_graphs
        pts.append(y_flat)
        idxs.append(jnp.repeat(jnp.arange(num_graphs, dtype=jnp.int32), rows_per_graph))
        n_y = y_flat.shape[0]

    all_pts = jnp.concatenate(pts, axis=0)
    all_idx = jnp.concatenate(idxs, axis=0)
    out = rotate_rows_pallas(all_pts, all_idx, r_flat)

    x_out = out[:n_nodes]
    edge_out = out[n_nodes:n_nodes + n_edges] if edge_attr is not None else None
    y_out = out[n_nodes + n_edges:n_nodes + n_edges + n_y].reshape(y.shape) if y is not None else None
    return x_out, edge_out, y_out, R, apply


# TODO(synk): torch_geometric Batch/to_data_list bookkeeping has no array
# equivalent; it is represented here as flat arrays + per-element graph indices.

# ----------------------------------------------------------------------------
# Demo / smoke test
# ----------------------------------------------------------------------------
if __name__ == "__main__":
    key = jax.random.PRNGKey(0)
    (k_data, k_edge, k_y, k_t1,
     k_big, k_ybig, k_idx, k_t2,
     k_x3, k_y3, k_i3, k_t3) = jax.random.split(key, 12)

    # --- small batched graph: G=2 graphs, 8 nodes each, 12 edges each ----------
    G = 2
    nodes_per_graph = 8
    edges_per_graph = 12
    N = G * nodes_per_graph
    E = G * edges_per_graph

    x = jax.random.normal(k_data, (N, 3), dtype=jnp.float32)
    edge_attr = jax.random.normal(k_edge, (E, 3), dtype=jnp.float32)
    y = jax.random.normal(k_y, (G, 3), dtype=jnp.float32)
    node_graph_idx = jnp.repeat(jnp.arange(G, dtype=jnp.int32), nodes_per_graph)
    edge_graph_idx = jnp.repeat(jnp.arange(G, dtype=jnp.int32), edges_per_graph)

    x_out, edge_out, y_out, R, apply = graph_rotation_transform(
        k_t1, x, edge_attr, y, node_graph_idx, edge_graph_idx,
        rotation_prob=0.5,
    )
    jax.block_until_ready((x_out, edge_out, y_out))

    # Reference check against plain JAX (v @ R_g.T per row).
    x_ref = jnp.einsum("nk,njk->nj", x, R[node_graph_idx])
    e_ref = jnp.einsum("nk,njk->nj", edge_attr, R[edge_graph_idx])
    y_ref = jnp.einsum("nk,njk->nj", y, R)
    assert jnp.allclose(x_out, x_ref, atol=1e-5)
    assert jnp.allclose(edge_out, e_ref, atol=1e-5)
    assert jnp.allclose(y_out, y_ref, atol=1e-5)
    assert jnp.allclose(
        jnp.linalg.norm(x_out, axis=-1), jnp.linalg.norm(x, axis=-1), atol=1e-5
    )

    # --- larger case (no edges): multi-tile one-hot/MXU path -------------------
    G2 = 8
    N2 = 20_000
    x2 = jax.random.normal(k_big, (N2, 3), dtype=jnp.float32)
    y2 = jax.random.normal(k_ybig, (G2, 3), dtype=jnp.float32)
    idx2 = jax.random.randint(k_idx, (N2,), 0, G2, dtype=jnp.int32)

    x2_out, _, y2_out, R2, _ = graph_rotation_transform(
        k_t2, x2, None, y2, idx2, None, rotation_prob=0.5,
    )
    jax.block_until_ready((x2_out, y2_out))
    x2_ref = jnp.einsum("nk,njk->nj", x2, R2[idx2])
    y2_ref = jnp.einsum("nk,njk->nj", y2, R2)
    assert jnp.allclose(x2_out, x2_ref, atol=1e-4)
    assert jnp.allclose(y2_out, y2_ref, atol=1e-5)

    # --- many-graph case: exercises the pre-gathered large-G fallback ----------
    G3 = 96
    N3 = 3_000
    x3 = jax.random.normal(k_x3, (N3, 3), dtype=jnp.float32)
    y3 = jax.random.normal(k_y3, (G3, 3), dtype=jnp.float32)
    idx3 = jax.random.randint(k_i3, (N3,), 0, G3, dtype=jnp.int32)

    x3_out, _, y3_out, R3, _ = graph_rotation_transform(
        k_t3, x3, None, y3, idx3, None, rotation_prob=0.5,
    )
    jax.block_until_ready((x3_out, y3_out))
    x3_ref = jnp.einsum("nk,njk->nj", x3, R3[idx3])
    y3_ref = jnp.einsum("nk,njk->nj", y3, R3)
    assert jnp.allclose(x3_out, x3_ref, atol=1e-4)
    assert jnp.allclose(y3_out, y3_ref, atol=1e-5)

    print("KERNEL_OK")
</pallas_src>

<mosaic_0001>
module attributes {stable_mosaic.version = 11 : i64} {
  func.func @_rotate_onehot_kernel(%arg0: i32, %arg1: memref<3x128xf32, #tpu.memory_space<vmem>>, %arg2: memref<1x128xi32, #tpu.memory_space<vmem>>, %arg3: memref<8x24xf32, #tpu.memory_space<vmem>>, %arg4: memref<3x128xf32, #tpu.memory_space<vmem>>) attributes {dimension_semantics = [#tpu.dimension_semantics<parallel>], iteration_bounds = array<i64: 1>, scalar_prefetch = 0 : i64, scratch_operands = 0 : i64, tpu.core_type = #tpu.core_type<tc>, window_params = [{transform_indices = @transform_0, window_bounds = array<i64: 3, 128>}, {transform_indices = @transform_1, window_bounds = array<i64: 1, 128>}, {pipeline_mode = #tpu.pipeline_mode<synchronous>, transform_indices = @transform_2, window_bounds = array<i64: 8, 24>}, {transform_indices = @transform_3, window_bounds = array<i64: 3, 128>}]} {
    %c0 = arith.constant 0 : index
    %c0_0 = arith.constant 0 : index
    %0 = vector.load %arg1[%c0, %c0_0] : memref<3x128xf32, #tpu.memory_space<vmem>>, vector<3x128xf32>
    %c0_1 = arith.constant 0 : index
    %c0_2 = arith.constant 0 : index
    %1 = vector.load %arg2[%c0_1, %c0_2] : memref<1x128xi32, #tpu.memory_space<vmem>>, vector<1x128xi32>
    %c0_3 = arith.constant 0 : index
    %c0_4 = arith.constant 0 : index
    %2 = vector.load %arg3[%c0_3, %c0_4] : memref<8x24xf32, #tpu.memory_space<vmem>>, vector<8x24xf32>
    %3 = tpu.iota {dimensions = array<i32: 0>} : vector<8x128xi32>
    %4 = vector.broadcast %1 : vector<1x128xi32> to vector<8x128xi32>
    %5 = arith.cmpi eq, %3, %4 : vector<8x128xi32>
    %6 = arith.extui %5 : vector<8x128xi1> to vector<8x128xi32>
    %7 = arith.sitofp %6 : vector<8x128xi32> to vector<8x128xf32>
    %8 = vector.extract_strided_slice %0 {offsets = [0, 0], sizes = [1, 128], strides = [1, 1]} : vector<3x128xf32> to vector<1x128xf32>
    %9 = vector.broadcast %8 : vector<1x128xf32> to vector<8x128xf32>
    %10 = arith.mulf %7, %9 : vector<8x128xf32>
    %11 = vector.extract_strided_slice %0 {offsets = [1, 0], sizes = [1, 128], strides = [1, 1]} : vector<3x128xf32> to vector<1x128xf32>
    %12 = vector.broadcast %11 : vector<1x128xf32> to vector<8x128xf32>
    %13 = arith.mulf %7, %12 : vector<8x128xf32>
    %14 = vector.extract_strided_slice %0 {offsets = [2, 0], sizes = [1, 128], strides = [1, 1]} : vector<3x128xf32> to vector<1x128xf32>
    %15 = vector.broadcast %14 : vector<1x128xf32> to vector<8x128xf32>
    %16 = arith.mulf %7, %15 : vector<8x128xf32>
    %17 = tpu.concatenate %10, %13, %16 in 0 : vector<8x128xf32>, vector<8x128xf32>, vector<8x128xf32> -> vector<24x128xf32>
    %cst = arith.constant dense<0.000000e+00> : vector<8x128xf32>
    %18 = tpu.matmul %2, %17, %cst {dimension_numbers = #tpu.dot_dimension_numbers<[1], [0], [0], [1], [0, 0, 1, 1], [], []>} : vector<8x24xf32>, vector<24x128xf32>, vector<8x128xf32> -> vector<8x128xf32>
    %19 = vector.extract_strided_slice %18 {offsets = [0, 0], sizes = [3, 128], strides = [1, 1]} : vector<8x128xf32> to vector<3x128xf32>
    %c0_5 = arith.constant 0 : index
    %c0_6 = arith.constant 0 : index
    %20 = vector.load %arg4[%c0_5, %c0_6] : memref<3x128xf32, #tpu.memory_space<vmem>>, vector<3x128xf32>
    tpu.vector_store %arg4[%c0_5, %c0_6], %19 {strides = array<i32>} : memref<3x128xf32, #tpu.memory_space<vmem>>, vector<3x128xf32>,
    return
  }
  func.func @transform_0(%arg0: i32) -> (i32, i32) {
    %c0_i32 = arith.constant 0 : i32
    %c0_i32_0 = arith.constant 0 : i32
    return %c0_i32, %arg0 : i32, i32
  }
  func.func @transform_1(%arg0: i32) -> (i32, i32) {
    %c0_i32 = arith.constant 0 : i32
    %c0_i32_0 = arith.constant 0 : i32
    return %c0_i32, %arg0 : i32, i32
  }
  func.func @transform_2(%arg0: i32) -> (i32, i32) {
    %c0_i32 = arith.constant 0 : i32
    %c0_i32_0 = arith.constant 0 : i32
    %c0_i32_1 = arith.constant 0 : i32
    return %c0_i32, %c0_i32_0 : i32, i32
  }
  func.func @transform_3(%arg0: i32) -> (i32, i32) {
    %c0_i32 = arith.constant 0 : i32
    %c0_i32_0 = arith.constant 0 : i32
    return %c0_i32, %arg0 : i32, i32
  }
}

</mosaic_0001>

<bundles_post_ra>
// kernel: graph_rotation_transform.17
= control target key start
LH: loop header
LB: loop body
LE: loop exit
PB: predicated region body
PF: predicated region fallthrough
CT: control target
= control target key end

     0   :  { %v17_v0 = vlaneseq  ;;  %v138_v1 = vmov 0.0   ;;  %vm139_vm0 = vmmov 0   ;;  %vm41_vm2 = vcmask 195584   ;;  %s172_s0 = inlined_call_operand.vmem [shape: f32[3,128], index: 0, kind: input, shape index: {}]   ;;  %s173_s1 = inlined_call_operand.vmem [shape: s32[1,128], index: 1, kind: input, shape index: {}]   ;;  %s174_s2 = inlined_call_operand.vmem [shape: f32[8,24], index: 2, kind: input, shape index: {}]   ;;  %s175_s3 = inlined_call_operand.vmem [shape: f32[3,128], index: 3, kind: output, shape index: {}]  }
   0x1   :  { %127 = vmatprep.subr.mxu0 %v138_v1  ;;  %v120_v2 = vld [vmem:[%s173_s1] ss:$0 sm:$0xff]  ;;  %133 = vmatprep.mubr.msk.f32.mxu0 %vm139_vm0, %v138_v1 }
   0x2   :  { %v18_v3 = vshrl.u32 %v17_v0, 7  ;;  %v14_v4 = vld [vmem:[%s172_s0] sm:$0x7] }
   0x3   :  { %v16_v15 = vld [vmem:[%s174_s2] sm:$0xff] }
   0x4   :  { %vm23_vm1 = vcmp.eq.s32.totalorder %v18_v3, %v120_v2  ;;  %v38_v5 = vsub.s32 2, %v18_v3  ;;  %v33_v6 = vsub.s32 1, %v18_v3  ;;  %v28_v7 = vsub.s32 0, %v18_v3 }
   0x5   :  { %v121_v8 = vsel %vm23_vm1, 1.0, %v138_v1 }
   0x6   :  { %v39_v9 = vrot.slane %v14_v4, %v38_v5  ;;  %v34_v10 = vrot.slane %v14_v4, %v33_v6  ;;  %v29_v11 = vrot.slane %v14_v4, %v28_v7 }
   0x8   :  { %v40_v12 = vmul.f32 %v121_v8, %v39_v9  ;;  %v35_v13 = vmul.f32 %v121_v8, %v34_v10  ;;  %v30_v14 = vmul.f32 %v121_v8, %v29_v11 }
   0xa   :  { %128 = vmatpush3.msra.mxu0 %v40_v12 }
   0xb   :  { %129 = vmatprep.subr.mxu0 %v138_v1 }
   0xc   :  { %130 = vmatpush3.msra.mxu0 %v35_v13 }
   0xd   :  { %131 = vmatprep.subr.mxu0 %v138_v1 }
   0xe   :  { %132 = vmatpush3.msra.mxu0 %v30_v14 }
   0xf   :  { %134 = vmatmul.mubr.msk.f32.vlgmr.msra.gmra.mxu0 %vm41_vm2, %v16_v15 }
  0xcf   :  { %v111_v16 = vpop.f32.mrf.mxu0 }
  0xd0   :  { %115 = vst [vmem:[%s175_s3] sm:$0x7] %v111_v16 }
  0xd1   :  { %v135_v17 = vpop.f32.mrf.mxu0 }

</bundles_post_ra>
